<compile_context>
chip_gen: v5e
topology: v5e:2x2
jax: 0.10.0
libtpu: 0.0.40
codegen_flags: <defaults>
</compile_context>

<pallas_src>
import functools

import jax
import jax.numpy as jnp
from jax.experimental import pallas as pl
from jax.experimental.pallas import tpu as pltpu

_LANE = 128
_SUBLANE = 8
_MIB = 1 << 20

# Weight-resident budget sized against v7x's 64 MiB *physical* VMEM
# (v5e / v6e have 128 MiB, so these caps are safe on every generation).
_RESIDENT_VMEM_BUDGET = 40 * _MIB
_VMEM_LIMIT_CAP = 56 * _MIB
_MIN_VMEM_LIMIT = 32 * _MIB


def _round_up(x: int, m: int) -> int:
    return (x + m - 1) // m * m


# --------------------------------------------------------------------------- #
# Kernels
# --------------------------------------------------------------------------- #
def _wres_matmul_kernel(x_ref, w_ref, o_ref):
    """Weight-resident matmul: one streaming pass over x.

    W's block index is constant across the 1-D M grid, so Pallas does not
    re-DMA it.  f32 accumulation happens inside the MXU and the result is
    written straight to the lane-dense output tile.
    """
    o_ref[...] = jnp.dot(
        x_ref[...], w_ref[...], preferred_element_type=jnp.float32
    ).astype(o_ref.dtype)


def _tiled_matmul_kernel(x_ref, w_ref, o_ref, acc_ref):
    """3-D tiled fallback (only when W is too large to stay VMEM-resident)."""
    k = pl.program_id(2)
    part = jnp.dot(x_ref[...], w_ref[...], preferred_element_type=jnp.float32)

    @pl.when(k == 0)
    def _():
        acc_ref[...] = part            # direct write: no zero-init + add pass

    @pl.when(k != 0)
    def _():
        acc_ref[...] += part

    @pl.when(k == pl.num_programs(2) - 1)
    def _():
        o_ref[...] = acc_ref[...].astype(o_ref.dtype)


# --------------------------------------------------------------------------- #
# Forward paths
# --------------------------------------------------------------------------- #
@functools.partial(
    jax.jit, static_argnames=("n_out", "tm", "out_dtype", "vmem_limit")
)
def _forward_resident(x, w_p, *, n_out, tm, out_dtype, vmem_limit):
    """Weight-resident path: grid=(Mp//tm,), W fully in VMEM."""
    M, K = x.shape
    Kp, Np = w_p.shape

    # Cast BEFORE padding (halves pad traffic for bf16 compute); pad only the
    # axes that need it.  W was padded/cast once at construction.
    x_c = x.astype(w_p.dtype)
    tm_eff = min(tm, _round_up(M, _SUBLANE))
    Mp = _round_up(M, tm_eff)
    if (Mp, Kp) != x_c.shape:
        x_c = jnp.pad(x_c, ((0, Mp - M), (0, Kp - K)))

    grid = (Mp // tm_eff,)
    cost = pl.CostEstimate(
        flops=2 * Mp * Np * Kp,
        transcendentals=0,
        bytes_accessed=(
            x_c.size * x_c.dtype.itemsize
            + w_p.size * w_p.dtype.itemsize
            + Mp * Np * jnp.dtype(out_dtype).itemsize
        ),
    )
    out_p = pl.pallas_call(
        _wres_matmul_kernel,
        out_shape=jax.ShapeDtypeStruct((Mp, Np), out_dtype),
        grid_spec=pltpu.PrefetchScalarGridSpec(
            num_scalar_prefetch=0,
            grid=grid,
            in_specs=[
                pl.BlockSpec((tm_eff, Kp), lambda i: (i, 0)),
                pl.BlockSpec((Kp, Np), lambda i: (0, 0)),   # VMEM resident
            ],
            out_specs=pl.BlockSpec((tm_eff, Np), lambda i: (i, 0)),
        ),
        compiler_params=pltpu.CompilerParams(
            dimension_semantics=("parallel",),
            vmem_limit_bytes=vmem_limit,
        ),
        cost_estimate=cost,
    )(x_c, w_p)
    return out_p[:M, :n_out]


@functools.partial(
    jax.jit,
    static_argnames=("n_out", "tm", "tn", "tk", "out_dtype", "vmem_limit"),
)
def _forward_tiled(x, w_p, *, n_out, tm, tn, tk, out_dtype, vmem_limit):
    """3-D tiled fallback for weights that do not fit the VMEM budget."""
    M, K = x.shape
    Kp, Np = w_p.shape          # already multiples of (tk, tn)

    x_c = x.astype(w_p.dtype)
    Mp = _round_up(M, tm)
    if (Mp, Kp) != x_c.shape:
        x_c = jnp.pad(x_c, ((0, Mp - M), (0, Kp - K)))

    grid = (Mp // tm, Np // tn, Kp // tk)
    cost = pl.CostEstimate(
        flops=2 * Mp * Np * Kp,
        transcendentals=0,
        bytes_accessed=(
            x_c.size * x_c.dtype.itemsize * (Np // tn)     # x re-read per N tile
            + w_p.size * w_p.dtype.itemsize * (Mp // tm)   # W re-read per M tile
            + Mp * Np * jnp.dtype(out_dtype).itemsize
        ),
    )
    out_p = pl.pallas_call(
        _tiled_matmul_kernel,
        out_shape=jax.ShapeDtypeStruct((Mp, Np), out_dtype),
        grid_spec=pltpu.PrefetchScalarGridSpec(
            num_scalar_prefetch=0,
            grid=grid,
            in_specs=[
                pl.BlockSpec((tm, tk), lambda i, j, k: (i, k)),
                pl.BlockSpec((tk, tn), lambda i, j, k: (k, j)),
            ],
            out_specs=pl.BlockSpec((tm, tn), lambda i, j, k: (i, j)),
            scratch_shapes=[pltpu.VMEM((tm, tn), jnp.float32)],
        ),
        compiler_params=pltpu.CompilerParams(
            dimension_semantics=("parallel", "parallel", "arbitrary"),
            vmem_limit_bytes=vmem_limit,
        ),
        cost_estimate=cost,
    )(x_c, w_p)
    return out_p[:M, :n_out]


# --------------------------------------------------------------------------- #
# Module wrapper
# --------------------------------------------------------------------------- #
class LinearEmbedding:
    """Minimal concrete realization of the abstract `Embedding` base class.

    Holds the weight padded/cast to the MXU compute dtype once at construction
    so per-forward work is a single streaming pass over x.
    """

    def __init__(self, w, *, compute_dtype=jnp.bfloat16,
                 tm: int = 256, tn: int = 256, tk: int = 512):
        self.in_dim = int(w.shape[0])
        self.set_embed_dim(int(w.shape[1]))
        self.compute_dtype = jnp.dtype(compute_dtype)
        self.tm, self.tn, self.tk = int(tm), int(tn), int(tk)
        self.w = w                      # raw weight (tiny-shape XLA fallback)

        cd = self.compute_dtype.itemsize
        Kp_r = _round_up(self.in_dim, _LANE)
        Np_r = _round_up(self.embed_dim, _LANE)
        # Conservative (everything double-buffered, f32 output) VMEM need for
        # the weight-resident design.
        resident_bytes = (2 * self.tm * Kp_r * cd        # x tiles
                          + 2 * Kp_r * Np_r * cd         # resident W
                          + 2 * self.tm * Np_r * 4)      # output tiles
        self._resident = resident_bytes <= _RESIDENT_VMEM_BUDGET

        if self._resident:
            Kp, Np = Kp_r, Np_r
            need = resident_bytes
        else:
            Kp = _round_up(self.in_dim, self.tk)
            Np = _round_up(self.embed_dim, self.tn)
            need = (2 * (self.tm * self.tk + self.tk * self.tn) * cd
                    + 2 * self.tm * self.tn * 4          # output tiles
                    + self.tm * self.tn * 4)             # f32 accumulator
        self._vmem_limit = int(
            min(_VMEM_LIMIT_CAP, max(_MIN_VMEM_LIMIT, need + 4 * _MIB)))

        # Pad + cast the weight ONCE (zero padding is exact for a matmul).
        w_p = w.astype(self.compute_dtype)
        if (Kp, Np) != (self.in_dim, self.embed_dim):
            w_p = jnp.pad(
                w_p, ((0, Kp - self.in_dim), (0, Np - self.embed_dim)))
        self.w_p = w_p

    def set_embed_dim(self, embed_dim):
        assert embed_dim is not None, "make sure embed_dim is not None"
        self.embed_dim = int(embed_dim)

    def __call__(self, x, *, use_pallas=None):
        assert x.shape[-1] == self.in_dim, "feature dim mismatch"
        lead = x.shape[:-1]
        x2 = x.reshape(-1, self.in_dim)
        M = x2.shape[0]
        out_dtype = jnp.dtype(x.dtype)

        if use_pallas is None:
            # Dispatch on real FLOPs *and* padding waste: below a few MFLOP, or
            # when padding inflates the work >3x, the fixed pallas_call cost
            # dominates and the fused XLA dot wins.
            real_flops = 2 * M * self.in_dim * self.embed_dim
            Kp, Np = self.w_p.shape
            padded_flops = 2 * _round_up(M, _SUBLANE) * Kp * Np
            use_pallas = (real_flops >= (8 << 20)
                          and padded_flops <= 3 * real_flops)

        if not use_pallas:
            out = jnp.dot(x2, self.w,
                          preferred_element_type=jnp.float32).astype(out_dtype)
        elif self._resident:
            out = _forward_resident(
                x2, self.w_p, n_out=self.embed_dim, tm=self.tm,
                out_dtype=out_dtype, vmem_limit=self._vmem_limit)
        else:
            out = _forward_tiled(
                x2, self.w_p, n_out=self.embed_dim, tm=self.tm, tn=self.tn,
                tk=self.tk, out_dtype=out_dtype, vmem_limit=self._vmem_limit)
        return out.reshape(*lead, self.embed_dim)


if __name__ == "__main__":
    key = jax.random.PRNGKey(0)
    k1, k2, k3, k4, k5, k6 = jax.random.split(key, 6)

    # ---- Case 1: tiny shape (8x32 @ 32x32) -> XLA fallback path, exact f32.
    b0, in0, e0 = 8, 32, 32
    x0 = jax.random.normal(k1, (b0, in0), dtype=jnp.float32)
    bound0 = 1.0 / (in0 ** 0.5)
    w0 = jax.random.uniform(k2, (in0, e0), minval=-bound0, maxval=bound0,
                            dtype=jnp.float32)
    emb0 = LinearEmbedding(w0)
    out0 = emb0(x0)
    jax.block_until_ready(out0)
    assert out0.shape == (b0, e0)
    assert jnp.allclose(out0, x0 @ w0, atol=1e-5, rtol=1e-5)

    # ---- Case 2: non-tile-multiple shape, default bf16 MXU operands, forced
    # through the weight-resident Pallas path (exercises K/N zero padding).
    b1, in1, e1 = 200, 160, 96
    x1 = jax.random.normal(k3, (b1, in1), dtype=jnp.float32)
    bound1 = 1.0 / (in1 ** 0.5)
    w1 = jax.random.uniform(k4, (in1, e1), minval=-bound1, maxval=bound1,
                            dtype=jnp.float32)
    emb1 = LinearEmbedding(w1)                     # compute_dtype = bf16
    out1 = emb1(x1, use_pallas=True)
    jax.block_until_ready(out1)
    ref1 = jnp.dot(x1.astype(jnp.bfloat16), w1.astype(jnp.bfloat16),
                   preferred_element_type=jnp.float32)
    assert out1.shape == (b1, e1)
    assert jnp.allclose(out1.astype(jnp.float32), ref1, atol=1e-2, rtol=1e-2)

    # ---- Case 3: multi-block M grid (two tm=256 blocks -> both v7x cores get
    # work) with exact f32 compute through the weight-resident path.
    b2, in2, e2 = 512, 256, 128
    x2 = jax.random.normal(k5, (b2, in2), dtype=jnp.float32)
    bound2 = 1.0 / (in2 ** 0.5)
    w2 = jax.random.uniform(k6, (in2, e2), minval=-bound2, maxval=bound2,
                            dtype=jnp.float32)
    emb2 = LinearEmbedding(w2, compute_dtype=jnp.float32)
    out2 = emb2(x2, use_pallas=True)
    jax.block_until_ready(out2)
    ref2 = x2 @ w2
    assert out2.shape == (b2, e2)
    assert jnp.allclose(out2, ref2, atol=2e-4, rtol=2e-4)

    print("KERNEL_OK")
</pallas_src>

<mosaic_0001>
module attributes {stable_mosaic.version = 11 : i64} {
  func.func @_wres_matmul_kernel(%arg0: i32, %arg1: memref<200x256xbf16, #tpu.memory_space<vmem>>, %arg2: memref<256x128xbf16, #tpu.memory_space<vmem>>, %arg3: memref<200x128xf32, #tpu.memory_space<vmem>>) attributes {dimension_semantics = [#tpu.dimension_semantics<parallel>], iteration_bounds = array<i64: 1>, scalar_prefetch = 0 : i64, scratch_operands = 0 : i64, tpu.core_type = #tpu.core_type<tc>, window_params = [{transform_indices = @transform_0, window_bounds = array<i64: 200, 256>}, {pipeline_mode = #tpu.pipeline_mode<synchronous>, transform_indices = @transform_1, window_bounds = array<i64: 256, 128>}, {transform_indices = @transform_2, window_bounds = array<i64: 200, 128>}]} {
    %c0 = arith.constant 0 : index
    %c0_0 = arith.constant 0 : index
    %0 = vector.load %arg1[%c0, %c0_0] : memref<200x256xbf16, #tpu.memory_space<vmem>>, vector<200x256xbf16>
    %c0_1 = arith.constant 0 : index
    %c0_2 = arith.constant 0 : index
    %1 = vector.load %arg2[%c0_1, %c0_2] : memref<256x128xbf16, #tpu.memory_space<vmem>>, vector<256x128xbf16>
    %cst = arith.constant dense<0.000000e+00> : vector<200x128xf32>
    %2 = tpu.matmul %0, %1, %cst {dimension_numbers = #tpu.dot_dimension_numbers<[1], [0], [0], [1], [0, 0, 1, 1], [], []>} : vector<200x256xbf16>, vector<256x128xbf16>, vector<200x128xf32> -> vector<200x128xf32>
    %c0_3 = arith.constant 0 : index
    %c0_4 = arith.constant 0 : index
    %3 = vector.load %arg3[%c0_3, %c0_4] : memref<200x128xf32, #tpu.memory_space<vmem>>, vector<200x128xf32>
    tpu.vector_store %arg3[%c0_3, %c0_4], %2 {strides = array<i32>} : memref<200x128xf32, #tpu.memory_space<vmem>>, vector<200x128xf32>,
    return
  }
  func.func @transform_0(%arg0: i32) -> (i32, i32) {
    %c0_i32 = arith.constant 0 : i32
    %c0_i32_0 = arith.constant 0 : i32
    return %arg0, %c0_i32 : i32, i32
  }
  func.func @transform_1(%arg0: i32) -> (i32, i32) {
    %c0_i32 = arith.constant 0 : i32
    %c0_i32_0 = arith.constant 0 : i32
    %c0_i32_1 = arith.constant 0 : i32
    return %c0_i32, %c0_i32_0 : i32, i32
  }
  func.func @transform_2(%arg0: i32) -> (i32, i32) {
    %c0_i32 = arith.constant 0 : i32
    %c0_i32_0 = arith.constant 0 : i32
    return %arg0, %c0_i32 : i32, i32
  }
}

</mosaic_0001>

<bundles_post_ra>
// kernel: _forward_resident.1
= control target key start
LH: loop header
LB: loop body
LE: loop exit
PB: predicated region body
PF: predicated region fallthrough
CT: control target
= control target key end

     0   :  { %s973_s1 = inlined_call_operand.vmem [shape: bf16[256,128], index: 1, kind: input, shape index: {}]   ;;  %s974_s0 = inlined_call_operand.vmem [shape: bf16[200,256], index: 0, kind: input, shape index: {}]   ;;  %s975_s2 = inlined_call_operand.vmem [shape: f32[200,128], index: 2, kind: output, shape index: {}]  }
   0x1   :  { %v657_v0 = vld [vmem:[%s973_s1 + $0x38] sm:$0xff]  ;;  %v656_v2 = vld [vmem:[%s973_s1 + $0x30] sm:$0xff]  ;;  %v655_v4 = vld [vmem:[%s973_s1 + $0x28] sm:$0xff] }
   0x2   :  { %v665_v1 = vld [vmem:[%s973_s1 + $0x78] sm:$0xff]  ;;  %291 = vmatpush.bf16.msra.mxu0 %v657_v0  ;;  %666 = vmatpush.bf16.msra.mxu2 %v657_v0  ;;  %v664_v3 = vld [vmem:[%s973_s1 + $0x70] sm:$0xff]  ;;  %v663_v5 = vld [vmem:[%s973_s1 + $0x68] sm:$0xff] }
   0x3   :  { %364 = vmatpush.bf16.msra.mxu1 %v665_v1  ;;  %674 = vmatpush.bf16.msra.mxu3 %v665_v1  ;;  %v654_v6 = vld [vmem:[%s973_s1 + $0x20] sm:$0xff]  ;;  %v653_v8 = vld [vmem:[%s973_s1 + $0x18] sm:$0xff]  ;;  %v652_v10 = vld [vmem:[%s973_s1 + $0x10] sm:$0xff] }
   0x4   :  { %v662_v7 = vld [vmem:[%s973_s1 + $0x60] sm:$0xff]  ;;  %v661_v9 = vld [vmem:[%s973_s1 + $0x58] sm:$0xff]  ;;  %v660_v11 = vld [vmem:[%s973_s1 + $0x50] sm:$0xff] }
   0x5   :  { %v651_v12 = vld [vmem:[%s973_s1 + $0x8] sm:$0xff]  ;;  %v650_v14 = vld [vmem:[%s973_s1] sm:$0xff]  ;;  %v640_v22 = vld [vmem:[%s974_s0 + $0x74] sm:$0xf] }
   0x6   :  { %292 = vmatpush.bf16.msra.mxu0 %v656_v2  ;;  %667 = vmatpush.bf16.msra.mxu2 %v656_v2  ;;  %v659_v13 = vld [vmem:[%s973_s1 + $0x48] sm:$0xff]  ;;  %v658_v15 = vld [vmem:[%s973_s1 + $0x40] sm:$0xff]  ;;  %v526_v23 = vld [vmem:[%s974_s0 + $0x78] sm:$0xf0] }
   0x7   :  { %365 = vmatpush.bf16.msra.mxu1 %v664_v3  ;;  %675 = vmatpush.bf16.msra.mxu3 %v664_v3  ;;  %v468_v16 = vld [vmem:[%s974_s0] sm:$0xf]  ;;  %v627_v17 = vld [vmem:[%s974_s0 + $0x4] sm:$0xf0]  ;;  %v626_v20 = vld [vmem:[%s974_s0 + $0x4] sm:$0xf]  ;;  %v529_v27 = vor.u32 %v640_v22, %v526_v23 }
   0x8   :  { %v516_v18 = vld [vmem:[%s974_s0 + $0x60] sm:$0xf]  ;;  %v639_v19 = vld [vmem:[%s974_s0 + $0x64] sm:$0xf0]  ;;  %v470_v21 = vld [vmem:[%s974_s0 + $0x8] sm:$0xf0]  ;;  %v469_v24 = vor.u32 %v627_v17, %v468_v16 }
   0x9   :  { %v517_v25 = vor.u32 %v639_v19, %v516_v18  ;;  %v473_v26 = vor.u32 %v626_v20, %v470_v21  ;;  %v476_v28 = vld [vmem:[%s974_s0 + $0x10] sm:$0xf]  ;;  %v629_v29 = vld [vmem:[%s974_s0 + $0x14] sm:$0xf0]  ;;  %v628_v32 = vld [vmem:[%s974_s0 + $0x14] sm:$0xf] }
   0xa   :  { %293 = vmatpush.bf16.msra.mxu0 %v655_v4  ;;  %668 = vmatpush.bf16.msra.mxu2 %v655_v4  ;;  %v524_v30 = vld [vmem:[%s974_s0 + $0x70] sm:$0xf]  ;;  %v641_v31 = vld [vmem:[%s974_s0 + $0x74] sm:$0xf0]  ;;  %v478_v33 = vld [vmem:[%s974_s0 + $0x18] sm:$0xf0]  ;;  %v477_v36 = vor.u32 %v629_v29, %v476_v28 }
   0xb   :  { %366 = vmatpush.bf16.msra.mxu1 %v663_v5  ;;  %676 = vmatpush.bf16.msra.mxu3 %v663_v5  ;;  %v642_v34 = vld [vmem:[%s974_s0 + $0x84] sm:$0xf]  ;;  %v534_v35 = vld [vmem:[%s974_s0 + $0x88] sm:$0xf0]  ;;  %v525_v37 = vor.u32 %v641_v31, %v524_v30  ;;  %v481_v38 = vor.u32 %v628_v32, %v478_v33  ;;  %v484_v40 = vld [vmem:[%s974_s0 + $0x20] sm:$0xf] }
   0xc   :  { %v537_v39 = vor.u32 %v642_v34, %v534_v35  ;;  %v631_v41 = vld [vmem:[%s974_s0 + $0x24] sm:$0xf0]  ;;  %v532_v42 = vld [vmem:[%s974_s0 + $0x80] sm:$0xf]  ;;  %v630_v44 = vld [vmem:[%s974_s0 + $0x24] sm:$0xf] }
   0xd   :  { %v643_v43 = vld [vmem:[%s974_s0 + $0x84] sm:$0xf0]  ;;  %v486_v45 = vld [vmem:[%s974_s0 + $0x28] sm:$0xf0]  ;;  %v644_v46 = vld [vmem:[%s974_s0 + $0x94] sm:$0xf]  ;;  %v485_v48 = vor.u32 %v631_v41, %v484_v40 }
   0xe   :  { %294 = vmatpush.bf16.msra.mxu0 %v654_v6  ;;  %669 = vmatpush.bf16.msra.mxu2 %v654_v6  ;;  %v542_v47 = vld [vmem:[%s974_s0 + $0x98] sm:$0xf0]  ;;  %v533_v49 = vor.u32 %v643_v43, %v532_v42  ;;  %v489_v50 = vor.u32 %v630_v44, %v486_v45  ;;  %v492_v52 = vld [vmem:[%s974_s0 + $0x30] sm:$0xf]  ;;  %v633_v53 = vld [vmem:[%s974_s0 + $0x34] sm:$0xf0] }
   0xf   :  { %367 = vmatpush.bf16.msra.mxu1 %v662_v7  ;;  %677 = vmatpush.bf16.msra.mxu3 %v662_v7  ;;  %v545_v51 = vor.u32 %v644_v46, %v542_v47  ;;  %v540_v54 = vld [vmem:[%s974_s0 + $0x90] sm:$0xf]  ;;  %v645_v55 = vld [vmem:[%s974_s0 + $0x94] sm:$0xf0]  ;;  %v632_v56 = vld [vmem:[%s974_s0 + $0x34] sm:$0xf]  ;;  %v493_v60 = vor.u32 %v633_v53, %v492_v52 }
  0x10   :  { %v494_v57 = vld [vmem:[%s974_s0 + $0x38] sm:$0xf0]  ;;  %v646_v58 = vld [vmem:[%s974_s0 + $0xa4] sm:$0xf]  ;;  %v550_v59 = vld [vmem:[%s974_s0 + $0xa8] sm:$0xf0]  ;;  %v541_v61 = vor.u32 %v645_v55, %v540_v54 }
  0x11   :  { %v497_v62 = vor.u32 %v632_v56, %v494_v57  ;;  %v553_v63 = vor.u32 %v646_v58, %v550_v59  ;;  %v500_v0 = vld [vmem:[%s974_s0 + $0x40] sm:$0xf]  ;;  %v635_v1 = vld [vmem:[%s974_s0 + $0x44] sm:$0xf0]  ;;  %v634_v4 = vld [vmem:[%s974_s0 + $0x44] sm:$0xf] }
  0x12   :  { %295 = vmatpush.bf16.msra.mxu0 %v653_v8  ;;  %670 = vmatpush.bf16.msra.mxu2 %v653_v8  ;;  %v548_v2 = vld [vmem:[%s974_s0 + $0xa0] sm:$0xf]  ;;  %v647_v3 = vld [vmem:[%s974_s0 + $0xa4] sm:$0xf0]  ;;  %v502_v5 = vld [vmem:[%s974_s0 + $0x48] sm:$0xf0]  ;;  %v501_v8 = vor.u32 %v635_v1, %v500_v0 }
  0x13   :  { %368 = vmatpush.bf16.msra.mxu1 %v661_v9  ;;  %678 = vmatpush.bf16.msra.mxu3 %v661_v9  ;;  %v648_v6 = vld [vmem:[%s974_s0 + $0xb4] sm:$0xf]  ;;  %v558_v7 = vld [vmem:[%s974_s0 + $0xb8] sm:$0xf0]  ;;  %v549_v9 = vor.u32 %v647_v3, %v548_v2  ;;  %v649_v16 = vld [vmem:[%s974_s0 + $0xb4] sm:$0xf0] }
  0x14   :  { %v636_v18 = vld [vmem:[%s974_s0 + $0x54] sm:$0xf]  ;;  %v510_v19 = vld [vmem:[%s974_s0 + $0x58] sm:$0xf0] }
  0x15   :  { %v513_v22 = vor.u32 %v636_v18, %v510_v19 }
  0x16   :  { %296 = vmatpush.bf16.msra.mxu0 %v652_v10  ;;  %671 = vmatpush.bf16.msra.mxu2 %v652_v10  ;;  %v505_v10 = vor.u32 %v634_v4, %v502_v5 }
  0x17   :  { %369 = vmatpush.bf16.msra.mxu1 %v660_v11  ;;  %679 = vmatpush.bf16.msra.mxu3 %v660_v11  ;;  %v561_v11 = vor.u32 %v648_v6, %v558_v7 }
  0x1a   :  { %297 = vmatpush.bf16.msra.mxu0 %v651_v12  ;;  %672 = vmatpush.bf16.msra.mxu2 %v651_v12  ;;  %v35_v12 = vld [vmem:[%s974_s0 + $0xc0] sm:$0xff] }
  0x1b   :  { %370 = vmatpush.bf16.msra.mxu1 %v659_v13  ;;  %680 = vmatpush.bf16.msra.mxu3 %v659_v13  ;;  %v508_v13 = vld [vmem:[%s974_s0 + $0x50] sm:$0xf]  ;;  %v142_v17 = vunpack.c.h.b16 %v35_v12 }
  0x1d   :  { %v168_v23 = vpack.c.b16 %v142_v17, %v142_v17 }
  0x1e   :  { %298 = vmatpush.bf16.msra.mxu0 %v650_v14  ;;  %673 = vmatpush.bf16.msra.mxu2 %v650_v14  ;;  %v637_v14 = vld [vmem:[%s974_s0 + $0x54] sm:$0xf0] }
  0x1f   :  { %371 = vmatpush.bf16.msra.mxu1 %v658_v15  ;;  %681 = vmatpush.bf16.msra.mxu3 %v658_v15  ;;  %v556_v15 = vld [vmem:[%s974_s0 + $0xb0] sm:$0xf]  ;;  %v509_v20 = vor.u32 %v637_v14, %v508_v13 }
  0x20   :  { %v557_v21 = vor.u32 %v649_v16, %v556_v15 }
  0x21   :  { %299 = vmatmul.bf16.vlgmr.msra.gmra.mxu0 %v469_v24  ;;  %329 = vmatmul.bf16.vlgmr.msra.gmra.mxu2 %v517_v25  ;;  %v141_v24 = vunpack.c.l.b16 %v35_v12  ;;  %v638_v25 = vld [vmem:[%s974_s0 + $0x64] sm:$0xf] }
  0x22   :  { %372 = vmatmul.bf16.vlgmr.msra.gmra.mxu1 %v473_v26  ;;  %407 = vmatmul.bf16.vlgmr.msra.gmra.mxu3 %v529_v27  ;;  %v518_v26 = vld [vmem:[%s974_s0 + $0x68] sm:$0xf0] }
  0x23   :  { %v167_v27 = vpack.c.b16 %v141_v24, %v141_v24  ;;  %v521_v28 = vor.u32 %v638_v25, %v518_v26 }
  0x31   :  { %304 = vmatmul.bf16.gmra.mxu0 %v477_v36  ;;  %334 = vmatmul.bf16.gmra.mxu2 %v525_v37 }
  0x32   :  { %377 = vmatmul.bf16.gmra.mxu1 %v481_v38  ;;  %412 = vmatmul.bf16.gmra.mxu3 %v537_v39 }
  0x41   :  { %309 = vmatmul.bf16.gmra.mxu0 %v485_v48  ;;  %339 = vmatmul.bf16.gmra.mxu2 %v533_v49 }
  0x42   :  { %382 = vmatmul.bf16.gmra.mxu1 %v489_v50  ;;  %417 = vmatmul.bf16.gmra.mxu3 %v545_v51 }
  0x51   :  { %314 = vmatmul.bf16.gmra.mxu0 %v493_v60  ;;  %344 = vmatmul.bf16.gmra.mxu2 %v541_v61 }
  0x52   :  { %387 = vmatmul.bf16.gmra.mxu1 %v497_v62  ;;  %422 = vmatmul.bf16.gmra.mxu3 %v553_v63 }
  0x61   :  { %319 = vmatmul.bf16.gmra.mxu0 %v501_v8  ;;  %349 = vmatmul.bf16.gmra.mxu2 %v549_v9 }
  0x62   :  { %392 = vmatmul.bf16.gmra.mxu1 %v505_v10  ;;  %427 = vmatmul.bf16.gmra.mxu3 %v561_v11 }
  0x71   :  { %324 = vmatmul.bf16.gmra.mxu0 %v509_v20  ;;  %354 = vmatmul.bf16.gmra.mxu2 %v557_v21 }
  0x72   :  { %397 = vmatmul.bf16.gmra.mxu1 %v513_v22  ;;  %432 = vmatmul.bf16.gmra.mxu3 %v168_v23 }
  0x81   :  { %359 = vmatmul.bf16.gmra.mxu2 %v167_v27 }
  0x82   :  { %402 = vmatmul.bf16.gmra.mxu1 %v521_v28 }
  0x9e   :  { %v300_v29 = vpop.f32.mrf.mxu0 }
  0x9f   :  { %v373_v30 = vpop.f32.mrf.mxu1 }
  0xa0   :  { %v374_v31 = vadd.f32 %v373_v30, %v300_v29 }
  0xa2   :  { %437 = vst [vmem:[%s975_s2] sm:$0xff] %v374_v31 }
  0xa4   :  { %v895_v32 = vpop.f32.mrf.mxu2 }
  0xa5   :  { %v408_v33 = vpop.f32.mrf.mxu3 }
  0xa6   :  { %v302_v34 = vpop.f32.mrf.mxu0 }
  0xa7   :  { %v375_v35 = vpop.f32.mrf.mxu1 }
  0xa8   :  { %v376_v36 = vadd.f32 %v375_v35, %v302_v34 }
  0xaa   :  { %438 = vst [vmem:[%s975_s2 + $0x8] sm:$0xff] %v376_v36 }
  0xac   :  { %v900_v37 = vpop.f32.mrf.mxu2 }
  0xad   :  { %v410_v38 = vpop.f32.mrf.mxu3 }
  0xae   :  { %v305_v39 = vpop.f32.mrf.mxu0 }
  0xaf   :  { %v378_v40 = vpop.f32.mrf.mxu1 }
  0xb0   :  { %v379_v41 = vadd.f32 %v378_v40, %v305_v39 }
  0xb2   :  { %439 = vst [vmem:[%s975_s2 + $0x10] sm:$0xff] %v379_v41 }
  0xb4   :  { %v335_v42 = vpop.f32.mrf.mxu2 }
  0xb5   :  { %v409_v43 = vadd.f32 %v408_v33, %v335_v42  ;;  %v413_v44 = vpop.f32.mrf.mxu3 }
  0xb6   :  { %v307_v45 = vpop.f32.mrf.mxu0 }
  0xb7   :  { %451 = vst [vmem:[%s975_s2 + $0x70] sm:$0xff] %v409_v43  ;;  %v380_v46 = vpop.f32.mrf.mxu1 }
  0xb8   :  { %v381_v47 = vadd.f32 %v380_v46, %v307_v45 }
  0xba   :  { %440 = vst [vmem:[%s975_s2 + $0x18] sm:$0xff] %v381_v47 }
  0xbc   :  { %v337_v48 = vpop.f32.mrf.mxu2 }
  0xbd   :  { %v411_v49 = vadd.f32 %v410_v38, %v337_v48  ;;  %v415_v50 = vpop.f32.mrf.mxu3 }
  0xbe   :  { %v310_v51 = vpop.f32.mrf.mxu0 }
  0xbf   :  { %452 = vst [vmem:[%s975_s2 + $0x78] sm:$0xff] %v411_v49  ;;  %v383_v52 = vpop.f32.mrf.mxu1 }
  0xc0   :  { %v384_v53 = vadd.f32 %v383_v52, %v310_v51 }
  0xc2   :  { %441 = vst [vmem:[%s975_s2 + $0x20] sm:$0xff] %v384_v53 }
  0xc4   :  { %v340_v54 = vpop.f32.mrf.mxu2 }
  0xc5   :  { %v414_v55 = vadd.f32 %v413_v44, %v340_v54  ;;  %v418_v56 = vpop.f32.mrf.mxu3 }
  0xc6   :  { %v312_v57 = vpop.f32.mrf.mxu0 }
  0xc7   :  { %453 = vst [vmem:[%s975_s2 + $0x80] sm:$0xff] %v414_v55  ;;  %v385_v58 = vpop.f32.mrf.mxu1 }
  0xc8   :  { %v386_v59 = vadd.f32 %v385_v58, %v312_v57 }
  0xca   :  { %442 = vst [vmem:[%s975_s2 + $0x28] sm:$0xff] %v386_v59 }
  0xcc   :  { %v342_v60 = vpop.f32.mrf.mxu2 }
  0xcd   :  { %v416_v61 = vadd.f32 %v415_v50, %v342_v60  ;;  %v420_v62 = vpop.f32.mrf.mxu3 }
  0xce   :  { %v315_v63 = vpop.f32.mrf.mxu0 }
  0xcf   :  { %454 = vst [vmem:[%s975_s2 + $0x88] sm:$0xff] %v416_v61  ;;  %v388_v0 = vpop.f32.mrf.mxu1 }
  0xd0   :  { %v389_v1 = vadd.f32 %v388_v0, %v315_v63 }
  0xd2   :  { %443 = vst [vmem:[%s975_s2 + $0x30] sm:$0xff] %v389_v1 }
  0xd4   :  { %v345_v2 = vpop.f32.mrf.mxu2 }
  0xd5   :  { %v419_v3 = vadd.f32 %v418_v56, %v345_v2  ;;  %v423_v4 = vpop.f32.mrf.mxu3 }
  0xd6   :  { %v317_v5 = vpop.f32.mrf.mxu0 }
  0xd7   :  { %455 = vst [vmem:[%s975_s2 + $0x90] sm:$0xff] %v419_v3  ;;  %v390_v6 = vpop.f32.mrf.mxu1 }
  0xd8   :  { %v391_v7 = vadd.f32 %v390_v6, %v317_v5 }
  0xda   :  { %444 = vst [vmem:[%s975_s2 + $0x38] sm:$0xff] %v391_v7 }
  0xdc   :  { %v347_v8 = vpop.f32.mrf.mxu2 }
  0xdd   :  { %v421_v9 = vadd.f32 %v420_v62, %v347_v8  ;;  %v425_v10 = vpop.f32.mrf.mxu3 }
  0xde   :  { %v320_v11 = vpop.f32.mrf.mxu0 }
  0xdf   :  { %456 = vst [vmem:[%s975_s2 + $0x98] sm:$0xff] %v421_v9  ;;  %v393_v12 = vpop.f32.mrf.mxu1 }
  0xe0   :  { %v394_v13 = vadd.f32 %v393_v12, %v320_v11 }
  0xe2   :  { %445 = vst [vmem:[%s975_s2 + $0x40] sm:$0xff] %v394_v13 }
  0xe4   :  { %v350_v14 = vpop.f32.mrf.mxu2 }
  0xe5   :  { %v424_v15 = vadd.f32 %v423_v4, %v350_v14  ;;  %v428_v16 = vpop.f32.mrf.mxu3 }
  0xe6   :  { %v322_v17 = vpop.f32.mrf.mxu0 }
  0xe7   :  { %457 = vst [vmem:[%s975_s2 + $0xa0] sm:$0xff] %v424_v15  ;;  %v395_v18 = vpop.f32.mrf.mxu1 }
  0xe8   :  { %v396_v19 = vadd.f32 %v395_v18, %v322_v17 }
  0xea   :  { %446 = vst [vmem:[%s975_s2 + $0x48] sm:$0xff] %v396_v19 }
  0xec   :  { %v352_v20 = vpop.f32.mrf.mxu2 }
  0xed   :  { %v426_v21 = vadd.f32 %v425_v10, %v352_v20  ;;  %v430_v22 = vpop.f32.mrf.mxu3 }
  0xee   :  { %v325_v23 = vpop.f32.mrf.mxu0 }
  0xef   :  { %458 = vst [vmem:[%s975_s2 + $0xa8] sm:$0xff] %v426_v21  ;;  %v398_v24 = vpop.f32.mrf.mxu1 }
  0xf0   :  { %v399_v25 = vadd.f32 %v398_v24, %v325_v23 }
  0xf2   :  { %447 = vst [vmem:[%s975_s2 + $0x50] sm:$0xff] %v399_v25 }
  0xf4   :  { %v355_v26 = vpop.f32.mrf.mxu2 }
  0xf5   :  { %v429_v27 = vadd.f32 %v428_v16, %v355_v26  ;;  %v433_v28 = vpop.f32.mrf.mxu3 }
  0xf6   :  { %v327_v29 = vpop.f32.mrf.mxu0 }
  0xf7   :  { %459 = vst [vmem:[%s975_s2 + $0xb0] sm:$0xff] %v429_v27  ;;  %v400_v30 = vpop.f32.mrf.mxu1 }
  0xf8   :  { %v401_v31 = vadd.f32 %v400_v30, %v327_v29 }
  0xfa   :  { %448 = vst [vmem:[%s975_s2 + $0x58] sm:$0xff] %v401_v31 }
  0xfc   :  { %v357_v33 = vpop.f32.mrf.mxu2 }
  0xfd   :  { %v431_v34 = vadd.f32 %v430_v22, %v357_v33  ;;  %v435_v35 = vpop.f32.mrf.mxu3 }
  0xff   :  { %460 = vst [vmem:[%s975_s2 + $0xb8] sm:$0xff] %v431_v34  ;;  %v403_v36 = vpop.f32.mrf.mxu1 }
 0x100   :  { %v404_v38 = vadd.f32 %v403_v36, %v895_v32 }
 0x102   :  { %449 = vst [vmem:[%s975_s2 + $0x60] sm:$0xff] %v404_v38 }
 0x104   :  { %v360_v39 = vpop.f32.mrf.mxu2 }
 0x105   :  { %v434_v40 = vadd.f32 %v433_v28, %v360_v39 }
 0x107   :  { %461 = vst [vmem:[%s975_s2 + $0xc0] sm:$0xff] %v434_v40  ;;  %v405_v41 = vpop.f32.mrf.mxu1 }
 0x108   :  { %v406_v42 = vadd.f32 %v405_v41, %v900_v37 }
 0x10a   :  { %450 = vst [vmem:[%s975_s2 + $0x68] sm:$0xff] %v406_v42 }
 0x10c   :  { %v362_v43 = vpop.f32.mrf.mxu2 }

</bundles_post_ra>
